<compile_context>
chip_gen: v5e
topology: v5e:2x2
jax: 0.10.0
libtpu: 0.0.40
codegen_flags: <defaults>
</compile_context>

<pallas_src>
import numpy as np

import jax
import jax.numpy as jnp
from jax import lax
from jax.experimental import pallas as pl
from jax.experimental.pallas import tpu as pltpu


def _round_up(x: int, m: int) -> int:
    return ((x + m - 1) // m) * m


def _vmem_capacity_bytes() -> int:
    try:
        return int(pltpu.get_tpu_info().vmem_capacity_bytes)
    except Exception:  # pragma: no cover - conservative fallback
        return 128 * 1024 * 1024


def _choose_tiles(B: int, Dc: int, itemsize: int, block_budget_bytes: int):
    """Returns (TM, TK, Bp, Dp, single_k)."""
    # Sublane granularity depends on dtype packing (f32: 8, bf16: 16, 8-bit: 32).
    sub = {4: 8, 2: 16, 1: 32}.get(itemsize, 8)
    if B <= 128:
        tm = _round_up(B, sub)
    else:
        # Prefer MXU-sized 256 tiles, but use 128 when it pads the batch less
        # (e.g. B=300: Bp 384 vs 512 -> ~1.8x less padded MXU/DMA work).
        tm = 128 if _round_up(B, 128) < _round_up(B, 256) else 256
    bp = _round_up(B, tm)

    # Feature (contraction) dim: lane-aligned; a block equal to the full
    # feature dim is allowed when Dc < 128, so tiny feature dims stay unpadded.
    dp = Dc if Dc <= 128 else _round_up(Dc, 128)

    # Single-k path (TK = full feature dim): 2 streams x 2 pipeline buffers
    # of a (tm, dp) tile must fit the per-generation block budget.
    if 4 * tm * dp * itemsize <= block_budget_bytes:
        return tm, dp, bp, dp, True

    # Fallback: k-tiled reduction with a persistent f32 accumulator.
    tk = 512
    dp = _round_up(Dc, tk)
    return tm, tk, bp, dp, False


def _scalar_to_block(x):
    """Place scalar x at [0, 0, 0] of a zero (1, 8, 128) f32 block (VPU-only)."""
    r = lax.broadcasted_iota(jnp.int32, (1, 8, 128), 1)
    c = lax.broadcasted_iota(jnp.int32, (1, 8, 128), 2)
    return jnp.where((r == 0) & (c == 0), x, jnp.float32(0.0))


# Contract the feature dim (axis 1) of both operands: A_i . Bm_j^T on the MXU,
# no transpose, native input dtype, f32 accumulation.
_DN = (((1,), (1,)), ((), ()))


def _bsc_kernel_single(ii_ref, jj_ref, a_ref, b_ref, out_ref):
    t = pl.program_id(0)
    d = lax.dot_general(a_ref[...], b_ref[...], _DN,
                        preferred_element_type=jnp.float32)
    # Strictly-upper blocks are counted twice (the diff matrix is symmetric).
    w = jnp.where(ii_ref[t] == jj_ref[t], jnp.float32(1.0), jnp.float32(2.0))
    out_ref[...] = _scalar_to_block(w * jnp.sum(d * d))


def _bsc_kernel_ktiled(ii_ref, jj_ref, a_ref, b_ref, out_ref, acc_ref):
    t = pl.program_id(0)
    k = pl.program_id(1)

    @pl.when(k == 0)
    def _init():
        acc_ref[...] = jnp.zeros_like(acc_ref)

    acc_ref[...] += lax.dot_general(a_ref[...], b_ref[...], _DN,
                                    preferred_element_type=jnp.float32)

    @pl.when(k == pl.num_programs(1) - 1)
    def _fold():
        d = acc_ref[...]
        w = jnp.where(ii_ref[t] == jj_ref[t], jnp.float32(1.0), jnp.float32(2.0))
        out_ref[...] = _scalar_to_block(w * jnp.sum(d * d))


def bsc_loss(composed_feats: jax.Array, target_feats: jax.Array,
             *, mxu_dtype=None) -> jax.Array:
    """Pallas implementation of BSCLoss.forward. Returns a scalar f32.

    mxu_dtype: optional dtype (e.g. jnp.bfloat16) to feed the MXU with;
    accumulation stays f32.  None keeps the input dtype (default, exact-ish).
    """
    assert composed_feats.shape == target_feats.shape
    assert composed_feats.ndim == 2
    B, D = composed_feats.shape

    c = composed_feats
    g = target_feats
    if mxu_dtype is not None:
        c = c.astype(mxu_dtype)
        g = g.astype(mxu_dtype)

    # Fused Gram-difference operands: A_i . Bm_j = c_i.c_j - t_i.t_j.
    a = jnp.concatenate([c, g], axis=1)       # (B, 2D)
    bm = jnp.concatenate([c, -g], axis=1)     # (B, 2D)
    Dc = 2 * D

    itemsize = jnp.dtype(a.dtype).itemsize
    cap = _vmem_capacity_bytes()
    # Generation-aware scoped-VMEM limit: 96 MiB on v5e/v6e (128 MiB phys),
    # 48 MiB on v7x (64 MiB phys).  Blocks get at most half of that.
    vmem_limit = min(96 * 1024 * 1024, (cap * 3) // 4)
    TM, TK, Bp, Dp, single_k = _choose_tiles(B, Dc, itemsize, vmem_limit // 2)
    TN = TM

    # Zero-padding is exact for this loss (padded rows/cols give zero Gram
    # entries, hence zero squared diff).
    if (Bp, Dp) != (B, Dc):
        pad = ((0, Bp - B), (0, Dp - Dc))
        a = jnp.pad(a, pad)
        bm = jnp.pad(bm, pad)

    gm = Bp // TM
    gk = Dp // TK

    # Upper-triangular (i <= j) block enumeration; j varies fastest so the
    # i-side block index repeats across consecutive steps and its DMA is
    # skipped by the pipeline (resident i-slab).
    pairs = [(i, j) for i in range(gm) for j in range(i, gm)]
    ii = jnp.asarray(np.array([p[0] for p in pairs], dtype=np.int32))
    jj = jnp.asarray(np.array([p[1] for p in pairs], dtype=np.int32))
    T = len(pairs)

    out_shape = jax.ShapeDtypeStruct((T, 8, 128), jnp.float32)

    if single_k:
        grid = (T,)
        in_specs = [
            # i-slab: resident across consecutive j (same block index).
            pl.BlockSpec((TM, Dp), lambda t, ii, jj: (ii[t], 0)),
            # j-slab: streamed.  If profiling shows exposed j-side DMA, add
            # pipeline_mode=pl.Buffered(3) here.
            pl.BlockSpec((TN, Dp), lambda t, ii, jj: (jj[t], 0)),
        ]
        out_specs = pl.BlockSpec((1, 8, 128), lambda t, ii, jj: (t, 0, 0))
        scratch = []
        kernel = _bsc_kernel_single
        semantics = ("parallel",)              # per-t output blocks -> safe
    else:
        grid = (T, gk)
        in_specs = [
            pl.BlockSpec((TM, TK), lambda t, k, ii, jj: (ii[t], k)),
            pl.BlockSpec((TN, TK), lambda t, k, ii, jj: (jj[t], k)),
        ]
        out_specs = pl.BlockSpec((1, 8, 128), lambda t, k, ii, jj: (t, 0, 0))
        scratch = [pltpu.VMEM((TM, TN), jnp.float32)]
        kernel = _bsc_kernel_ktiled
        semantics = ("parallel", "arbitrary")

    per_tile = pl.pallas_call(
        kernel,
        out_shape=out_shape,
        grid_spec=pltpu.PrefetchScalarGridSpec(
            num_scalar_prefetch=2,
            grid=grid,
            in_specs=in_specs,
            out_specs=out_specs,
            scratch_shapes=scratch,
        ),
        compiler_params=pltpu.CompilerParams(
            dimension_semantics=semantics,
            vmem_limit_bytes=vmem_limit,
        ),
    )(ii, jj, a, bm)

    # Each tile wrote its weighted squared-diff sum at [t, 0, 0] (zeros
    # elsewhere); reduce once outside and take the mean over the ORIGINAL
    # B*B elements (padding contributed zero).
    total = jnp.sum(per_tile)
    return total / jnp.float32(B * B)


def bsc_loss_ref(composed_feats, target_feats):
    hp = jax.lax.Precision.HIGHEST
    q = jnp.dot(composed_feats, composed_feats.T, precision=hp)
    g = jnp.dot(target_feats, target_feats.T, precision=hp)
    return jnp.mean((q - g) ** 2)


if __name__ == "__main__":
    key = jax.random.PRNGKey(0)
    k1, k2, k3, k4 = jax.random.split(key, 4)

    # Small single-block case: full-dim feature block, T = 1 triangular tile.
    B, D = 8, 32
    composed = jax.random.normal(k1, (B, D), dtype=jnp.float32)
    target = jax.random.normal(k2, (B, D), dtype=jnp.float32)
    loss = jax.block_until_ready(bsc_loss(composed, target))
    ref = bsc_loss_ref(composed, target)
    assert jnp.allclose(loss, ref, rtol=1e-3, atol=1e-5), (loss, ref)

    # Multi-block case: exercises the triangular grid (gm=3 -> 6 of 9 blocks),
    # the 2x off-diagonal weighting, and exact B/feature zero-padding.
    B2, D2 = 300, 200
    composed2 = jax.random.normal(k3, (B2, D2), dtype=jnp.float32)
    target2 = jax.random.normal(k4, (B2, D2), dtype=jnp.float32)
    loss2 = jax.block_until_ready(bsc_loss(composed2, target2))
    ref2 = bsc_loss_ref(composed2, target2)
    assert jnp.allclose(loss2, ref2, rtol=2e-2, atol=2e-2), (loss2, ref2)

    # Optional fast path: bf16 MXU inputs (f32 accumulation), looser tolerance.
    loss3 = jax.block_until_ready(
        bsc_loss(composed2, target2, mxu_dtype=jnp.bfloat16))
    assert jnp.allclose(loss3, ref2, rtol=3e-2, atol=3e-2), (loss3, ref2)

    print("KERNEL_OK")
</pallas_src>

<mosaic_0001>
module attributes {stable_mosaic.version = 11 : i64} {
  func.func @_bsc_kernel_single(%arg0: i32, %arg1: memref<1xi32, #tpu.memory_space<smem>>, %arg2: memref<1xi32, #tpu.memory_space<smem>>, %arg3: memref<8x64xf32, #tpu.memory_space<vmem>>, %arg4: memref<8x64xf32, #tpu.memory_space<vmem>>, %arg5: memref<1x8x128xf32, #tpu.memory_space<vmem>>) attributes {dimension_semantics = [#tpu.dimension_semantics<parallel>], iteration_bounds = array<i64: 1>, scalar_prefetch = 2 : i64, scratch_operands = 0 : i64, tpu.core_type = #tpu.core_type<tc>, window_params = [{transform_indices = @transform_0, window_bounds = array<i64: 8, 64>}, {transform_indices = @transform_1, window_bounds = array<i64: 8, 64>}, {transform_indices = @transform_2, window_bounds = array<i64: 1, 8, 128>}]} {
    %c0 = arith.constant 0 : index
    %c0_0 = arith.constant 0 : index
    %0 = vector.load %arg3[%c0, %c0_0] : memref<8x64xf32, #tpu.memory_space<vmem>>, vector<8x64xf32>
    %c0_1 = arith.constant 0 : index
    %c0_2 = arith.constant 0 : index
    %1 = vector.load %arg4[%c0_1, %c0_2] : memref<8x64xf32, #tpu.memory_space<vmem>>, vector<8x64xf32>
    %cst = arith.constant dense<0.000000e+00> : vector<8x8xf32>
    %2 = tpu.matmul %0, %1, %cst {dimension_numbers = #tpu.dot_dimension_numbers<[1], [1], [0], [0], [0, 0, 1, 0], [], []>} : vector<8x64xf32>, vector<8x64xf32>, vector<8x8xf32> -> vector<8x8xf32>
    %3 = arith.index_cast %arg0 : i32 to index
    %4 = memref.load %arg1[%3] : memref<1xi32, #tpu.memory_space<smem>>
    %5 = arith.index_cast %arg0 : i32 to index
    %6 = memref.load %arg2[%5] : memref<1xi32, #tpu.memory_space<smem>>
    %7 = arith.cmpi eq, %4, %6 : i32
    %cst_3 = arith.constant 1.000000e+00 : f32
    %cst_4 = arith.constant 2.000000e+00 : f32
    %8 = arith.select %7, %cst_3, %cst_4 : f32
    %9 = arith.mulf %2, %2 : vector<8x8xf32>
    %10 = vector.shape_cast %9 : vector<8x8xf32> to vector<1x8x8xf32>
    %cst_5 = arith.constant dense<0.000000e+00> : vector<1xf32>
    %11 = vector.multi_reduction <add>, %10, %cst_5 [1, 2] : vector<1x8x8xf32> to vector<1xf32>
    %12 = vector.shape_cast %11 : vector<1xf32> to vector<1x1x1xf32>
    %13 = vector.extract %12[0, 0, 0] : f32 from vector<1x1x1xf32>
    %14 = arith.mulf %8, %13 : f32
    %15 = tpu.iota {dimensions = array<i32: 1>} : vector<1x8x128xi32>
    %16 = tpu.iota {dimensions = array<i32: 2>} : vector<1x8x128xi32>
    %c0_i32 = arith.constant 0 : i32
    %17 = vector.broadcast %c0_i32 : i32 to vector<1x8x128xi32>
    %18 = arith.cmpi eq, %15, %17 : vector<1x8x128xi32>
    %c0_i32_6 = arith.constant 0 : i32
    %19 = vector.broadcast %c0_i32_6 : i32 to vector<1x8x128xi32>
    %20 = arith.cmpi eq, %16, %19 : vector<1x8x128xi32>
    %21 = arith.andi %18, %20 : vector<1x8x128xi1>
    %cst_7 = arith.constant 0.000000e+00 : f32
    %22 = vector.broadcast %14 : f32 to vector<1x8x128xf32>
    %23 = vector.broadcast %cst_7 : f32 to vector<1x8x128xf32>
    %24 = arith.select %21, %22, %23 : vector<1x8x128xi1>, vector<1x8x128xf32>
    %c0_8 = arith.constant 0 : index
    %c0_9 = arith.constant 0 : index
    %c0_10 = arith.constant 0 : index
    %25 = vector.load %arg5[%c0_8, %c0_9, %c0_10] : memref<1x8x128xf32, #tpu.memory_space<vmem>>, vector<1x8x128xf32>
    tpu.vector_store %arg5[%c0_8, %c0_9, %c0_10], %24 {strides = array<i32>} : memref<1x8x128xf32, #tpu.memory_space<vmem>>, vector<1x8x128xf32>,
    return
  }
  func.func @transform_0(%arg0: i32, %arg1: memref<1xi32, #tpu.memory_space<smem>>, %arg2: memref<1xi32, #tpu.memory_space<smem>>) -> (i32, i32) {
    %0 = arith.index_cast %arg0 : i32 to index
    %1 = memref.load %arg1[%0] : memref<1xi32, #tpu.memory_space<smem>>
    %c0_i32 = arith.constant 0 : i32
    %c0_i32_0 = arith.constant 0 : i32
    return %1, %c0_i32 : i32, i32
  }
  func.func @transform_1(%arg0: i32, %arg1: memref<1xi32, #tpu.memory_space<smem>>, %arg2: memref<1xi32, #tpu.memory_space<smem>>) -> (i32, i32) {
    %0 = arith.index_cast %arg0 : i32 to index
    %1 = memref.load %arg2[%0] : memref<1xi32, #tpu.memory_space<smem>>
    %c0_i32 = arith.constant 0 : i32
    %c0_i32_0 = arith.constant 0 : i32
    return %1, %c0_i32 : i32, i32
  }
  func.func @transform_2(%arg0: i32, %arg1: memref<1xi32, #tpu.memory_space<smem>>, %arg2: memref<1xi32, #tpu.memory_space<smem>>) -> (i32, i32, i32) {
    %c0_i32 = arith.constant 0 : i32
    %c0_i32_0 = arith.constant 0 : i32
    %c0_i32_1 = arith.constant 0 : i32
    return %arg0, %c0_i32, %c0_i32_0 : i32, i32, i32
  }
}

</mosaic_0001>

<bundles_post_ra>
// kernel: tpu_custom_call.1
= control target key start
LH: loop header
LB: loop body
LE: loop exit
PB: predicated region body
PF: predicated region fallthrough
CT: control target
= control target key end

     0   :  { %11 = vsyncpa [#allocation6], 0  ;;  %s278_s0 = inlined_call_operand.<no memory space> [shape: s32[1], index: 0, kind: input, shape index: {}]   ;;  %s279_s1 = inlined_call_operand.<no memory space> [shape: s32[1], index: 1, kind: input, shape index: {}]   ;;  %s280_s2 = inlined_call_operand.hbm [shape: f32[8,64], index: 2, kind: input, shape index: {}]   ;;  %s281_s3 = inlined_call_operand.hbm [shape: f32[8,64], index: 3, kind: input, shape index: {}]   ;;  %s282_s4 = inlined_call_operand.hbm [shape: f32[1,8,128], index: 4, kind: output, shape index: {}]  }
   0x1   :  { %12 = vsyncpa [#allocation9], 0 }
   0x2   :  { %13 = vsyncpa [#allocation7], 0  ;;  %s130_s17 = sshll.u32 %s278_s0, 3  ;;  %s217_s21 = smov [#allocation5]  }
   0x3   :  { %s20_s20 = scalar_lea.hbm %s280_s2, %s130_s17  ;;  %s24_s22 = sshll.u32 %s217_s21, 4  ;;  %s25_s22 = int_to_ptr.vmem [resolvable:$true] %s24_s22 }
   0x4   :  { %s22_s23 = sshll.u32 %s20_s20, 4  ;;  %s131_s26 = sshll.u32 %s279_s1, 3  ;;  %s23_s23 = int_to_ptr.hbm [resolvable:$true] %s22_s23 }
   0x5   :  { %s139_s27 = sshra.s32 %s23_s23, 4  ;;  %s143_s5 = scalar_lea.hbm %s280_s2, 8  ;;  %s140_s27 = int_to_ptr.hbm [resolvable:$true] %s139_s27 }
   0x6   :  { %s141_s28 = scalar_lea.hbm %s140_s27, 8  ;;  %p144_p1 = scmp.lt.s32.totalorder %s140_s27, %s280_s2 }
   0x7   :  { %p142_p0 = scmp.ne.s32.totalorder %s140_s27, %s141_s28  ;;  %p145_p2 = scmp.lt.s32.totalorder %s143_s5, %s141_s28 }
   0x9   :  { %p146_p3 = por %p145_p2, %p144_p1 }
   0xb   :  { %p147_p4 = pnand %p146_p3, %p142_p0 }
   0xd   :  { %150 = shalt.err (!%p147_p4)
}
   0xe   :  { %27 = dma.hbm_to_vmem [thread:$0]  %s23_s23, 128, %s25_s22, [#allocation6]  }
   0xf   :  { %s34_s10 = scalar_lea.hbm %s281_s3, %s131_s26  ;;  %s218_s12 = smov [#allocation8]  }
  0x10   :  { %s36_s11 = sshll.u32 %s34_s10, 4  ;;  %s38_s13 = sshll.u32 %s218_s12, 4  ;;  %s37_s11 = int_to_ptr.hbm [resolvable:$true] %s36_s11  ;;  %s39_s13 = int_to_ptr.vmem [resolvable:$true] %s38_s13 }
  0x11   :  { %s163_s14 = sshra.s32 %s37_s11, 4  ;;  %s167_s17 = scalar_lea.hbm %s281_s3, 8  ;;  %s164_s14 = int_to_ptr.hbm [resolvable:$true] %s163_s14 }
  0x12   :  { %s165_s15 = scalar_lea.hbm %s164_s14, 8  ;;  %p168_p6 = scmp.lt.s32.totalorder %s164_s14, %s281_s3 }
  0x13   :  { %p166_p5 = scmp.ne.s32.totalorder %s164_s14, %s165_s15  ;;  %p169_p7 = scmp.lt.s32.totalorder %s167_s17, %s165_s15 }
  0x15   :  { %p170_p8 = por %p169_p7, %p168_p6 }
  0x17   :  { %p171_p9 = pnand %p170_p8, %p166_p5 }
  0x19   :  { %174 = shalt.err (!%p171_p9)
}
  0x1a   :  { %41 = dma.hbm_to_vmem [thread:$0]  %s37_s11, 128, %s39_s13, [#allocation9]  }
  0x1b   :  { %211 = dma.done.wait [#allocation6], 128  }
  0x1c   :  { %212 = vsyncadd [#allocation6], 4294967168 }
  0x1d   :  { %213 = dma.done.wait [#allocation9], 128  }
  0x1e   :  { %214 = vsyncadd [#allocation9], 4294967168  ;;  %vm54_vm0 = vcmask 523264   ;;  %v53_v0 = vld [vmem:[#allocation8] sm:$0xff]  ;;  %v52_v1 = vld [vmem:[#allocation5] sm:$0xff]  ;;  %vm86_vm1 = vcmask 64512   ;;  %v98_v12 = vlaneseq  ;;  %p83_p10 = scmp.eq.s32.totalorder %s278_s0, %s279_s1 }
  0x1f   :  { %132 = vmatpush.xpose.msk.msra.mxu0 %vm54_vm0, %v53_v0  ;;  %s219_s24 = smov [#allocation10]   ;;  %s115_s29 = sshll.u32 %s282_s4, 4  ;;  %s116_s29 = int_to_ptr.hbm [resolvable:$true] %s115_s29 }
  0x20   :  { %v99_v13 = vshrl.u32 %v98_v12, 7  ;;  %v101_v14 = vand.u32 127, %v98_v12  ;;  %s84_s23 = scalar_select %p83_p10, 1.0, 2.0 }
  0x21   :  { %s113_s25 = sshll.u32 %s219_s24, 4  ;;  %s114_s25 = int_to_ptr.vmem [resolvable:$true] %s113_s25 }
  0x22   :  { %133 = vmatmul.msk.f32.vlgmr.msra.gmra.mxu0 %vm54_vm0, %v52_v1  ;;  %vm102_vm2 = vcmp.eq.s32.totalorder %v99_v13, 0  ;;  %vm103_vm3 = vcmp.eq.s32.totalorder %v101_v14, 0 }
  0x23   :  { %vm104_vm4 = vmand %vm102_vm2, %vm103_vm3 }
  0x9f   :  { %v78_v2 = vpop.f32.mrf.mxu0 }
  0xa0   :  { %v85_v3 = vmul.f32 %v78_v2, %v78_v2 }
  0xa2   :  { %v87_v4 = vsel %vm86_vm1, %v85_v3, 0.0 }
  0xa3   :  { %88 = vadd.xlane.f32.xlu0 %v87_v4 }
 0x116   :  { %v89_v5 = vpop.xlane.xlu0 %88 }
 0x117   :  { %v90_v6 = vrot.slane %v89_v5, 4 }
 0x119   :  { %v91_v7 = vadd.f32 %v90_v6, %v89_v5 }
 0x11b   :  { %v92_v8 = vrot.slane %v91_v7, 2 }
 0x11d   :  { %v93_v9 = vadd.f32 %v92_v8, %v91_v7 }
 0x11f   :  { %v94_v10 = vrot.slane %v93_v9, 1 }
 0x121   :  { %v95_v11 = vadd.f32 %v94_v10, %v93_v9 }
 0x123   :  { %134 = vpush %v95_v11 }
 0x154   :  { %s135_s26 = spop %134 }
 0x155   :  { %s97_s30 = smul.f32 %s135_s26, %s84_s23 }
 0x157   :  { %v105_v15 = vstv %s97_s30 }
 0x158   :  { %v106_v16 = vsel %vm104_vm4, %v105_v15, 0.0 }
 0x159   :  { %107 = vst [vmem:[#allocation10] sm:$0xff] %v106_v16 }
 0x15a   :  { %118 = dma.vmem_to_hbm [thread:$0]  %s114_s25, 128, %s116_s29, [#allocation7]  }
 0x15b   :  { %215 = dma.done.wait [#allocation7], 128  }
 0x15c   :  { %216 = vsyncadd [#allocation7], 4294967168 }
 0x15d   :  { %123 = vsyncpa [#allocation6], 1 }
 0x15e   :  { %124 = vsyncpa [#allocation9], 1 }
 0x15f   :  { %125 = vsyncpa [#allocation7], 1 }

</bundles_post_ra>
